<compile_context>
chip_gen: v7x
topology: tpu7x:2x2x1
jax: 0.10.0
libtpu: 0.0.40
codegen_flags: <defaults>
</compile_context>

<pallas_src>
import functools

import jax
import jax.numpy as jnp
from jax.experimental import pallas as pl
from jax.experimental.pallas import tpu as pltpu


# ---------------------------------------------------------------------------
# Fused single-pass kernel: whole (C, HW) slab of one batch resident in VMEM.
# ---------------------------------------------------------------------------
def _fused_kernel(x_ref, w1_ref, w2_ref, o_ref, *, hw):
    # x_ref/o_ref: (1, C, HW); w1_ref: (Cr, C); w2_ref: (C, Cr)
    x = x_ref[0].astype(jnp.float32)                      # (C, HW)
    avg = jnp.sum(x, axis=-1, keepdims=True) * (1.0 / hw)  # (C, 1) exact mean
    mx = jnp.max(x, axis=-1, keepdims=True)               # (C, 1)
    w1 = w1_ref[...]                                      # (Cr, C)
    w2 = w2_ref[...]                                      # (C, Cr)
    # Shared MLP on both pooled vectors; fc2 is linear so add after ReLU.
    h = (jnp.maximum(jnp.dot(w1, avg, preferred_element_type=jnp.float32), 0.0)
         + jnp.maximum(jnp.dot(w1, mx, preferred_element_type=jnp.float32),
                       0.0))                              # (Cr, 1)
    attn = jax.nn.sigmoid(
        jnp.dot(w2, h, preferred_element_type=jnp.float32))  # (C, 1)
    o_ref[0] = (x * attn).astype(o_ref.dtype)


# ---------------------------------------------------------------------------
# Two-pass fallback: pass 1 = streaming reduction + attention vector,
#                    pass 2 = streaming elementwise scale.
# ---------------------------------------------------------------------------
def _reduce_attn_kernel(x_ref, w1_ref, w2_ref, attn_ref, sum_sc, max_sc, *,
                        hw, tile):
    # x_ref: (1, C, T); w1_ref: (Cr, C); w2_ref: (C, Cr)
    # attn_ref: (1, C, 1); sum_sc/max_sc: (C, 1) f32 scratch
    t = pl.program_id(1)
    n_t = pl.num_programs(1)

    @pl.when(t == 0)
    def _init():
        sum_sc[...] = jnp.zeros_like(sum_sc)
        max_sc[...] = jnp.full_like(max_sc, -jnp.inf)

    x = x_ref[0].astype(jnp.float32)  # (C, T)

    if hw % tile != 0:
        # Mask lanes past the true spatial extent (ragged last tile).
        lane = jax.lax.broadcasted_iota(jnp.int32, x.shape, 1) + t * tile
        valid = lane < hw
        x_sum = jnp.where(valid, x, 0.0)
        x_max = jnp.where(valid, x, -jnp.inf)
    else:
        x_sum = x
        x_max = x

    sum_sc[...] += jnp.sum(x_sum, axis=-1, keepdims=True)
    max_sc[...] = jnp.maximum(max_sc[...],
                              jnp.max(x_max, axis=-1, keepdims=True))

    @pl.when(t == n_t - 1)
    def _finalize():
        avg = sum_sc[...] * (1.0 / hw)          # (C, 1) exact mean under tiling
        mx = max_sc[...]                        # (C, 1)
        w1 = w1_ref[...]                        # (Cr, C)
        w2 = w2_ref[...]                        # (C, Cr)
        h = (jnp.maximum(jnp.dot(w1, avg, preferred_element_type=jnp.float32),
                         0.0)
             + jnp.maximum(jnp.dot(w1, mx, preferred_element_type=jnp.float32),
                           0.0))                # (Cr, 1)
        a = jnp.dot(w2, h, preferred_element_type=jnp.float32)  # (C, 1)
        attn_ref[0] = jax.nn.sigmoid(a)


def _scale_kernel(x_ref, attn_ref, o_ref):
    # x_ref/o_ref: (1, C, T); attn_ref: (1, C, 1)
    o_ref[0] = (x_ref[0] * attn_ref[0]).astype(o_ref.dtype)


def _choose_tile(C, HW, bytes_per_elt, target_block_bytes=2 << 20):
    """Lane-dense HW tile: multiple of 128, ~<=2 MiB per block buffer."""
    t = max(128, (target_block_bytes // (C * bytes_per_elt)) // 128 * 128)
    hw_padded = pl.cdiv(HW, 128) * 128
    return int(min(t, hw_padded))


def channel_attention_basic_block(x, w1, w2, *, force_two_pass=False):
    """x: (B, C, H, W); w1: (Cr, C); w2: (C, Cr). Returns (B, C, H, W)."""
    B, C, H, W = x.shape
    HW = H * W
    Cr = w1.shape[0]
    x2 = x.reshape(B, C, HW)
    itemsize = jnp.dtype(x.dtype).itemsize

    # ---- Fused single-pass path (1 read + 1 write of x) ---------------------
    # Needs (in + out) slabs double-buffered in VMEM; stay well under the
    # smallest default scoped-VMEM limit (16 MiB on v5e).
    slab_bytes = C * HW * itemsize
    if not force_two_pass and 4 * slab_bytes <= 12 * (1 << 20):
        out = pl.pallas_call(
            functools.partial(_fused_kernel, hw=HW),
            out_shape=jax.ShapeDtypeStruct((B, C, HW), x.dtype),
            grid_spec=pltpu.PrefetchScalarGridSpec(
                num_scalar_prefetch=0,
                grid=(B,),
                in_specs=[
                    pl.BlockSpec((1, C, HW), lambda b: (b, 0, 0)),
                    pl.BlockSpec((Cr, C), lambda b: (0, 0)),   # resident
                    pl.BlockSpec((C, Cr), lambda b: (0, 0)),   # resident
                ],
                out_specs=pl.BlockSpec((1, C, HW), lambda b: (b, 0, 0)),
            ),
            compiler_params=pltpu.CompilerParams(
                dimension_semantics=("parallel",)),
        )(x2, w1, w2)
        return out.reshape(B, C, H, W)

    # ---- Two-pass fallback (2 reads + 1 write of x) -------------------------
    T = _choose_tile(C, HW, itemsize)
    n_t = int(pl.cdiv(HW, T))

    # Pass 1: pooled stats + attention vector (B, C, 1)
    reduce_kernel = functools.partial(_reduce_attn_kernel, hw=HW, tile=T)
    attn = pl.pallas_call(
        reduce_kernel,
        out_shape=jax.ShapeDtypeStruct((B, C, 1), jnp.float32),
        grid_spec=pltpu.PrefetchScalarGridSpec(
            num_scalar_prefetch=0,
            grid=(B, n_t),
            in_specs=[
                pl.BlockSpec((1, C, T), lambda b, t: (b, 0, t)),
                pl.BlockSpec((Cr, C), lambda b, t: (0, 0)),   # resident weights
                pl.BlockSpec((C, Cr), lambda b, t: (0, 0)),   # resident weights
            ],
            out_specs=pl.BlockSpec((1, C, 1), lambda b, t: (b, 0, 0)),
            scratch_shapes=[
                pltpu.VMEM((C, 1), jnp.float32),   # running sum
                pltpu.VMEM((C, 1), jnp.float32),   # running max
            ],
        ),
        compiler_params=pltpu.CompilerParams(
            dimension_semantics=("parallel", "arbitrary")),
    )(x2, w1, w2)

    # Pass 2: weight-free elementwise scale (streams at HBM roofline)
    out = pl.pallas_call(
        _scale_kernel,
        out_shape=jax.ShapeDtypeStruct((B, C, HW), x.dtype),
        grid_spec=pltpu.PrefetchScalarGridSpec(
            num_scalar_prefetch=0,
            grid=(B, n_t),
            in_specs=[
                pl.BlockSpec((1, C, T), lambda b, t: (b, 0, t)),
                pl.BlockSpec((1, C, 1), lambda b, t: (b, 0, 0)),
            ],
            out_specs=pl.BlockSpec((1, C, T), lambda b, t: (b, 0, t)),
        ),
        compiler_params=pltpu.CompilerParams(
            dimension_semantics=("parallel", "parallel")),
    )(x2, attn)

    return out.reshape(B, C, H, W)


def _reference(x, w1, w2):
    # Pure-JAX reference of the PyTorch forward.
    avg_p = jnp.mean(x, axis=(2, 3), keepdims=True)      # (B,C,1,1)
    max_p = jnp.max(x, axis=(2, 3), keepdims=True)       # (B,C,1,1)

    def mlp(p):
        h = jnp.einsum('rc,bcij->brij', w1, p)
        h = jnp.maximum(h, 0.0)
        return jnp.einsum('cr,brij->bcij', w2, h)

    attn = jax.nn.sigmoid(mlp(avg_p) + mlp(max_p))
    return attn * x


if __name__ == "__main__":
    key = jax.random.PRNGKey(0)
    B, C, H, W = 2, 4, 16, 16
    Cr = max(C // 16, 1)  # out_channels = 1 if C // 16 == 0 else C // 16

    kx, k1, k2 = jax.random.split(key, 3)
    x = jax.random.normal(kx, (B, C, H, W), dtype=jnp.float32)
    # Deterministic synthetic weights (1x1 conv weights, no bias).
    w1 = jax.random.normal(k1, (Cr, C), dtype=jnp.float32) * (1.0 / jnp.sqrt(C))
    w2 = jax.random.normal(k2, (C, Cr), dtype=jnp.float32) * (1.0 / jnp.sqrt(Cr))

    ref = _reference(x, w1, w2)

    # Fused single-pass path (taken at this small shape).
    out_fused = jax.block_until_ready(channel_attention_basic_block(x, w1, w2))
    assert jnp.allclose(out_fused, ref, atol=1e-5, rtol=1e-5), \
        "fused path mismatch vs reference"

    # Two-pass fallback path (exercised explicitly for coverage).
    out_2p = jax.block_until_ready(
        channel_attention_basic_block(x, w1, w2, force_two_pass=True))
    assert jnp.allclose(out_2p, ref, atol=1e-5, rtol=1e-5), \
        "two-pass path mismatch vs reference"

    print("KERNEL_OK")
</pallas_src>

<mosaic_0001>
module attributes {stable_mosaic.version = 11 : i64} {
  func.func @_fused_kernel(%arg0: i32, %arg1: memref<1x4x256xf32, #tpu.memory_space<vmem>>, %arg2: memref<1x4xf32, #tpu.memory_space<vmem>>, %arg3: memref<4x1xf32, #tpu.memory_space<vmem>>, %arg4: memref<1x4x256xf32, #tpu.memory_space<vmem>>) attributes {dimension_semantics = [#tpu.dimension_semantics<parallel>], iteration_bounds = array<i64: 2>, scalar_prefetch = 0 : i64, scratch_operands = 0 : i64, tpu.core_type = #tpu.core_type<tc>, window_params = [{transform_indices = @transform_0, window_bounds = array<i64: 1, 4, 256>}, {pipeline_mode = #tpu.pipeline_mode<synchronous>, transform_indices = @transform_1, window_bounds = array<i64: 1, 4>}, {pipeline_mode = #tpu.pipeline_mode<synchronous>, transform_indices = @transform_2, window_bounds = array<i64: 4, 1>}, {transform_indices = @transform_3, window_bounds = array<i64: 1, 4, 256>}]} {
    %c0 = arith.constant 0 : index
    %c0_0 = arith.constant 0 : index
    %c0_1 = arith.constant 0 : index
    %0 = vector.load %arg1[%c0, %c0_0, %c0_1] : memref<1x4x256xf32, #tpu.memory_space<vmem>>, vector<1x4x256xf32>
    %1 = vector.shape_cast %0 : vector<1x4x256xf32> to vector<4x256xf32>
    %cst = arith.constant dense<0.000000e+00> : vector<4xf32>
    %2 = vector.multi_reduction <add>, %1, %cst [1] : vector<4x256xf32> to vector<4xf32>
    %3 = vector.shape_cast %2 : vector<4xf32> to vector<4x1xf32>
    %cst_2 = arith.constant 3.906250e-03 : f32
    %4 = vector.broadcast %cst_2 : f32 to vector<4x1xf32>
    %5 = arith.mulf %3, %4 : vector<4x1xf32>
    %cst_3 = arith.constant dense<0xFF800000> : vector<4xf32>
    %6 = vector.multi_reduction <maximumf>, %1, %cst_3 [1] : vector<4x256xf32> to vector<4xf32>
    %7 = vector.shape_cast %6 : vector<4xf32> to vector<4x1xf32>
    %c0_4 = arith.constant 0 : index
    %c0_5 = arith.constant 0 : index
    %8 = vector.load %arg2[%c0_4, %c0_5] : memref<1x4xf32, #tpu.memory_space<vmem>>, vector<1x4xf32>
    %c0_6 = arith.constant 0 : index
    %c0_7 = arith.constant 0 : index
    %9 = vector.load %arg3[%c0_6, %c0_7] : memref<4x1xf32, #tpu.memory_space<vmem>>, vector<4x1xf32>
    %cst_8 = arith.constant dense<0.000000e+00> : vector<1x1xf32>
    %10 = tpu.matmul %8, %5, %cst_8 {dimension_numbers = #tpu.dot_dimension_numbers<[1], [0], [0], [1], [0, 0, 1, 1], [], []>} : vector<1x4xf32>, vector<4x1xf32>, vector<1x1xf32> -> vector<1x1xf32>
    %cst_9 = arith.constant 0.000000e+00 : f32
    %11 = vector.broadcast %cst_9 : f32 to vector<1x1xf32>
    %12 = arith.maximumf %10, %11 : vector<1x1xf32>
    %cst_10 = arith.constant dense<0.000000e+00> : vector<1x1xf32>
    %13 = tpu.matmul %8, %7, %cst_10 {dimension_numbers = #tpu.dot_dimension_numbers<[1], [0], [0], [1], [0, 0, 1, 1], [], []>} : vector<1x4xf32>, vector<4x1xf32>, vector<1x1xf32> -> vector<1x1xf32>
    %cst_11 = arith.constant 0.000000e+00 : f32
    %14 = vector.broadcast %cst_11 : f32 to vector<1x1xf32>
    %15 = arith.maximumf %13, %14 : vector<1x1xf32>
    %16 = arith.addf %12, %15 : vector<1x1xf32>
    %cst_12 = arith.constant dense<0.000000e+00> : vector<4x1xf32>
    %17 = tpu.matmul %9, %16, %cst_12 {dimension_numbers = #tpu.dot_dimension_numbers<[1], [0], [0], [1], [0, 0, 1, 1], [], []>} : vector<4x1xf32>, vector<1x1xf32>, vector<4x1xf32> -> vector<4x1xf32>
    %18 = arith.negf %17 : vector<4x1xf32>
    %19 = math.exp %18 : vector<4x1xf32>
    %cst_13 = arith.constant 1.000000e+00 : f32
    %20 = vector.broadcast %cst_13 : f32 to vector<4x1xf32>
    %21 = arith.addf %20, %19 : vector<4x1xf32>
    %22 = arith.divf %20, %21 : vector<4x1xf32>
    %23 = vector.broadcast %22 : vector<4x1xf32> to vector<4x256xf32>
    %24 = arith.mulf %1, %23 : vector<4x256xf32>
    %c0_14 = arith.constant 0 : index
    %c0_15 = arith.constant 0 : index
    %c0_16 = arith.constant 0 : index
    %25 = vector.load %arg4[%c0_14, %c0_15, %c0_16] : memref<1x4x256xf32, #tpu.memory_space<vmem>>, vector<1x4x256xf32>
    %26 = vector.shape_cast %25 : vector<1x4x256xf32> to vector<4x256xf32>
    %27 = vector.shape_cast %24 : vector<4x256xf32> to vector<1x4x256xf32>
    tpu.vector_store %arg4[%c0_14, %c0_15, %c0_16], %27 {strides = array<i32>} : memref<1x4x256xf32, #tpu.memory_space<vmem>>, vector<1x4x256xf32>,
    return
  }
  func.func @transform_0(%arg0: i32) -> (i32, i32, i32) {
    %c0_i32 = arith.constant 0 : i32
    %c0_i32_0 = arith.constant 0 : i32
    %c0_i32_1 = arith.constant 0 : i32
    return %arg0, %c0_i32, %c0_i32_0 : i32, i32, i32
  }
  func.func @transform_1(%arg0: i32) -> (i32, i32) {
    %c0_i32 = arith.constant 0 : i32
    %c0_i32_0 = arith.constant 0 : i32
    %c0_i32_1 = arith.constant 0 : i32
    return %c0_i32, %c0_i32_0 : i32, i32
  }
  func.func @transform_2(%arg0: i32) -> (i32, i32) {
    %c0_i32 = arith.constant 0 : i32
    %c0_i32_0 = arith.constant 0 : i32
    %c0_i32_1 = arith.constant 0 : i32
    return %c0_i32, %c0_i32_0 : i32, i32
  }
  func.func @transform_3(%arg0: i32) -> (i32, i32, i32) {
    %c0_i32 = arith.constant 0 : i32
    %c0_i32_0 = arith.constant 0 : i32
    %c0_i32_1 = arith.constant 0 : i32
    return %arg0, %c0_i32, %c0_i32_0 : i32, i32, i32
  }
}

</mosaic_0001>

<bundles_post_ra>
// kernel: tpu_custom_call.1
= control target key start
LH: loop header
LB: loop body
LE: loop exit
PB: predicated region body
PF: predicated region fallthrough
CT: control target
= control target key end

     0   :  { %8 = vsyncpa [#allocation3], 0  ;;  %s943_s0 = inlined_call_operand.hbm [shape: f32[2,4,256], index: 0, kind: input, shape index: {}]   ;;  %s944_s1 = inlined_call_operand.vmem [shape: f32[1,4], index: 1, kind: input, shape index: {}]   ;;  %s945_s2 = inlined_call_operand.vmem [shape: f32[4,1], index: 2, kind: input, shape index: {}]   ;;  %s946_s3 = inlined_call_operand.hbm [shape: f32[2,4,256], index: 3, kind: output, shape index: {}]  }
   0x1   :  { %10 = vsyncpa [#allocation3 + $0x1], 0 }
   0x2   :  { %11 = vsyncpa [#allocation4], 0 }
   0x3   :  { %13 = vsyncpa [#allocation4 + $0x1], 0  ;;  %s766_s12 = smov 0   ;;  %s768_s13 = smov 0  }
   0x4   :  { %s770_s14 = smov 0   ;;  %s772_s15 = smov 0  }
   0x5 LB: > { %s787_s16 = sadd.s32 4294967295, %s738_s15   ;;  %s541_s17 = sadd.s32 4294967294, %s738_s15   ;;  %s738_s15 = sphi %s772_s15, %s961_s15   ;;  %s734_s14 = sphi %s770_s14, %s960_s14   ;;  %s730_s13 = sphi %s768_s13, %s959_s13   ;;  %s726_s12 = sphi %s766_s12, %s958_s12  }
   0x6   : > { %s791_s18 = sadd.s32 1, %s738_s15   ;;  %s26_s19 = sadd.s32 1, %s734_s14 }
   0x7   : > { %s23_s20 = ssub.s32 %s738_s15, %s791_s18  ;;  %p33_p0 = scmp.ne.s32.totalorder %s734_s14, %s730_s13 }
   0x8   : > { %p24_p1 = scmp.eq.s32.totalorder %s23_s20, 0  ;;  %p34_p2 = scmp.eq.s32.totalorder %s738_s15, 0 }
   0x9   : > { %p39_p3 = scmp.ne.s32.totalorder %s730_s13, %s726_s12  ;;  %p40_p4 = scmp.eq.s32.totalorder %s787_s16, 0 }
   0xa   : > { %s803_s21 = scalar_select %p24_p1, %s734_s14, %s26_s19  }
   0xb   : > { %p805_p5 = por %p34_p2, %p33_p0  ;;  %p809_p6 = por %p40_p4, %p39_p3 }
   0xc   : > { %p105_p7 = scmp.eq.s32.totalorder %s787_s16, 1  ;;  %p111_p8 = scmp.eq.s32.totalorder %s541_s17, 1 }
   0xd   : > { %p597_p10 = scmp.lt.s32.totalorder %s738_s15, 2  ;;  %s137_s26 = sand.u32 1, %s734_s14  }
   0xe   : > { %p816_p11 = por %p105_p7, %p33_p0  ;;  %p820_p12 = por %p111_p8, %p39_p3 }
   0xf   : > { %s562_s27 = sshll.u32 %s738_s15, 7  ;;  %s544_s28 = sshll.u32 %s137_s26, 3 }
  0x10   : > { %s950_s24 = scalar_select %p816_p11, 1, 0 }
  0x11   : > { %s951_s25 = scalar_select %p820_p12, 1, 0 }
  0x12   : > { %s829_s4 = scalar_lea.hbm %s943_s0, %s562_s27  ;;  %s141_s5 = scalar_lea.vmem [#allocation2], %s544_s28 }
  0x13   : > { %s149_s6 = sshll.u32 %s141_s5, 4  ;;  %p833_p13 = pnand %p597_p10, %p805_p5  ;;  %s837_s6 = int_to_ptr.vmem [resolvable:$true] %s149_s6 }
  0x14   : > { %s138_s8 = scalar_lea.sflag [#allocation3], %s137_s26  ;;  %s642_s9 = scalar_lea.hbm %s829_s4, 128 }
  0x15   : > { %p643_p2 = scmp.ne.s32.totalorder %s829_s4, %s642_s9  ;;  %p644_p3 = pneg %p833_p13 }
  0x16   : > { %s647_s17 = scalar_lea.hbm %s943_s0, 256  ;;  %p648_p5 = scmp.lt.u32.totalorder %s829_s4, %s943_s0 }
  0x17   : > { %p645_p4 = pnand %p644_p3, %p643_p2  ;;  %p649_p8 = scmp.lt.u32.totalorder %s647_s17, %s642_s9 }
  0x18   : > { %p651_p9 = scmp.lt.u32.totalorder %s642_s9, %s829_s4 }
  0x19   : > { %p646_p7 = pneg %p645_p4  ;;  %p650_p10 = por %p649_p8, %p648_p5 }
  0x1b   : > { %p652_p0 = por %p651_p9, %p650_p10 }
  0x1d   : > { %p653_p1 = pnand %p652_p0, %p646_p7 }
  0x1f   : > { %656 = shalt.err (!%p653_p1)
}
  0x20   : > { %s657_s22 = scalar_lea.vmem %s837_s6, 128  ;;  %s740_s26 = smov [#allocation2]  }
  0x21   : > { %p658_p2 = scmp.ne.s32.totalorder %s837_s6, %s657_s22  ;;  %s662_s27 = sshll.u32 %s740_s26, 4  ;;  %s663_s27 = int_to_ptr.vmem [resolvable:$false] %s662_s27 }
  0x22   : > { %s664_s28 = scalar_lea.vmem %s663_s27, 256  ;;  %p665_p11 = scmp.lt.s32.totalorder %s837_s6, %s663_s27 }
  0x23   : > { %p660_p4 = pnand %p658_p2, %p644_p3  ;;  %p666_p5 = scmp.lt.s32.totalorder %s664_s28, %s657_s22 }
  0x25   : > { %p661_p12 = pneg %p660_p4  ;;  %p667_p8 = por %p666_p5, %p665_p11 }
  0x27   : > { %p668_p9 = pnand %p667_p8, %p661_p12 }
  0x29   : > { %671 = shalt.err (!%p668_p9)
}
  0x2a   : > { %592 = dma.hbm_to_vmem [thread:$0]  (!%p833_p13), %s829_s4, 128, %s837_s6, %s138_s8  }
  0x2b   : > { %p953_p0 = scmp.lt.s32.totalorder %s738_s15, 3  ;;  %p954_p1 = scmp.ge.s32.totalorder %s738_s15, 1 }
  0x2d   : > { %p155_p3 = pnand %p954_p1, %p953_p0 }
  0x2e   : > { %s871_s29 = sand.u32 (!%p155_p3), 1, %s730_s13  }
  0x2f   : > { %158 = sbr.rel (%p155_p3) target bundleno = 809 (0x329), region = 32  ;;  %s548_s30 = sshll.u32 (!%p155_p3), %s871_s29, 3 }
  0x30   : > { %s161_s5 = scalar_lea.sflag (!%p155_p3), [#allocation3], %s871_s29  ;;  %s164_s7 = scalar_lea.vmem (!%p155_p3), [#allocation2], %s548_s30 }
  0x36   : > { %717 = dma.done.wait (%p809_p6), %s161_s5, 128  }
  0x37   : > { %719 = vsyncadd (%p809_p6), %s161_s5, 4294967168  ;;  %vm191_vm0 = vcmask 1043456   ;;  %v187_v0 = vld [vmem:[%s164_s7] sm:$0xff]  ;;  %v741_v8 = vmov 0.0   ;;  %vm742_vm1 = vmmov 0   ;;  %vm205_vm2 = vcmask 31744  }
  0x38   : > { %v189_v1 = vcombine.high %v187_v0, %v187_v0  ;;  %v192_v2 = vsel %vm191_vm0, %v187_v0, 0.0  ;;  %v198_v4 = vsel %vm191_vm0, %v187_v0, -inf  ;;  %570 = vmatprep.subr.mxu0 %v741_v8  ;;  %575 = vmatprep.subr.mxu1 %v741_v8  ;;  %v203_v11 = vld [vmem:[%s944_s1] sm:$0x1]  ;;  %vm362_vm3 = vcmask 1040384   ;;  %s563_s9 = sshll.u32 %s787_s16, 7 }
  0x39   : > { %572 = vmatprep.mubr.msk.f32.mxu0 %vm742_vm1, %v741_v8  ;;  %577 = vmatprep.mubr.msk.f32.mxu1 %vm742_vm1, %v741_v8  ;;  %v204_v20 = vld [vmem:[%s945_s2] sm:$0xf]  ;;  %vm358_vm4 = vcmask 7168   ;;  %v743_v21 = vmov 0   ;;  %v744_v28 = vmov 839922192   ;;  %v449_v30 = vlaneseq  ;;  %s899_s20 = scalar_lea.hbm %s946_s3, %s563_s9 }
  0x3a   : > { %v193_v3 = vsel %vm191_vm0, %v189_v1, 0.0  ;;  %v199_v5 = vsel %vm191_vm0, %v189_v1, -inf  ;;  %635 = vset.pattern.permute.xlu1 %v743_v21  ;;  %636 = vset.pattern.permute.xlu0 %v743_v21  ;;  %v447_v29 = vunpack.c.l.s4 %v744_v28  ;;  %s186_s10 = scalar_lea.vmem [#allocation5], %s548_s30  ;;  %s457_s22 = scalar_lea.sflag [#allocation4], %s871_s29 }
  0x3b   : > { %v194_v6 = vadd.f32 %v193_v3, %v192_v2  ;;  %v200_v7 = vmax.f32 %v198_v4, %v199_v5  ;;  %v450_v32 = vshrl.u32 %v449_v30, 7  ;;  %s471_s11 = sshll.u32 %s186_s10, 4  ;;  %p955_p11 = scmp.ne.s32.totalorder %s950_s24, 0  ;;  %s901_s11 = int_to_ptr.vmem [resolvable:$true] %s471_s11 }
  0x3c   : > { %v448_v31 = vunpack.c.0.s8 %v447_v29  ;;  %s672_s26 = scalar_lea.vmem %s901_s11, 128  ;;  %s745_s16 = smov [#allocation5]  }
  0x3d   : > { %195 = vadd.xlane.f32.xlu0 %v194_v6  ;;  %p673_p6 = scmp.ne.s32.totalorder %s901_s11, %s672_s26  ;;  %s676_s27 = sshll.u32 %s745_s16, 4  ;;  %s677_s27 = int_to_ptr.vmem [resolvable:$false] %s676_s27 }
  0x3e   : > { %v451_v33 = vsub.s32 %v448_v31, %v450_v32  ;;  %s678_s28 = scalar_lea.vmem %s677_s27, 256  ;;  %p679_p7 = scmp.lt.s32.totalorder %s901_s11, %s677_s27 }
  0x3f   : > { %p674_p12 = pnand %p673_p6, %p955_p11  ;;  %p680_p10 = scmp.lt.s32.totalorder %s678_s28, %s672_s26 }
  0x41   : > { %201 = vmax.xlane.f32.xlu0 %v200_v7  ;;  %p675_p13 = pneg %p674_p12  ;;  %p681_p2 = por %p680_p10, %p679_p7 }
  0x43   : > { %p682_p4 = pnand %p681_p2, %p675_p13 }
  0xca   : > { %v196_v9 = vpop.xlane.xlu0 %195 }
  0xcb   : > { %v197_v10 = vmul.f32 0.00390625, %v196_v9 }
  0xcd   : > { %571 = vmatpush3.msk.msra.mxu0 %vm191_vm0, %v197_v10 }
  0xce   : > { %v202_v12 = vpop.xlane.xlu0 %201  ;;  %573 = vmatmul.mubr.msk.f32.vlgmr.msra.gmra.mrb[0].mxu0 %vm205_vm2, %v203_v11  ;;  %580 = vmatprep.subr.mxu0 %v741_v8 }
  0xcf   : > { %576 = vmatpush3.msk.msra.mxu1 %vm191_vm0, %v202_v12  ;;  %582 = vmatprep.mubr.msk.f32.mxu0 %vm742_vm1, %v741_v8 }
  0xd0   : > { %578 = vmatmul.mubr.msk.f32.vlgmr.msra.gmra.mrb[0].mxu1 %vm205_vm2, %v203_v11 }
 0x1a1   : > { %v278_v13 = vpop.f32.mrb[0].mxu0 }
 0x1a2   : > { %v282_v14 = vmax.f32 %v278_v13, 0.0  ;;  %v574_v15 = vpop.f32.mrb[1].mxu0 }
 0x1a3   : > { %v352_v16 = vpop.f32.mrb[0].mxu1 }
 0x1a4   : > { %v356_v17 = vmax.f32 %v352_v16, 0.0  ;;  %v579_v18 = vpop.f32.mrb[1].mxu1 }
 0x1a6   : > { %v357_v19 = vadd.f32 %v356_v17, %v282_v14 }
 0x1a8   : > { %581 = vmatpush3.msk.msra.mxu0 %vm362_vm3, %v357_v19 }
 0x1a9   : > { %583 = vmatmul.mubr.msk.f32.vlgmr.msra.gmra.mrb[2].mxu0 %vm358_vm4, %v204_v20 }
 0x27c   : > { %v432_v22 = vpop.f32.mrb[2].mxu0 }
 0x27d   : > { %v556_v23 = vmul.f32 -1.442695, %v432_v22  ;;  %v584_v24 = vpop.f32.mrb[3].mxu0 }
 0x27f   : > { %638 = vpow2.f32 %v556_v23 }
 0x289   : > { %v639_v25 = vpop.eup %638 }
 0x28a   : > { %v439_v26 = vadd.f32 1.0, %v639_v25 }
 0x28c   : > { %640 = vrcp.f32 %v439_v26 }
 0x296   : > { %v641_v27 = vpop.eup %640 }
 0x297   : > { %444 = vperm.xlu1 %635, %v641_v27  }
 0x316   : > { %v445_v34 = vpop.permute.xlu1 %444 }
 0x317   : > { %v452_v35 = vrot.slane %v445_v34, %v451_v33 }
 0x319   : > { %v454_v36 = vmul.f32 %v452_v35, %v187_v0 }
 0x31b   : > { %455 = vst [vmem:[%s186_s10] sm:$0xff] %v454_v36 }
 0x31c   : > { %685 = shalt.err (!%p682_p4)
}
 0x31d   : > { %s686_s29 = scalar_lea.hbm %s899_s20, 128  ;;  %s690_s7 = scalar_lea.hbm %s946_s3, 256 }
 0x31e   : > { %p687_p5 = scmp.ne.s32.totalorder %s899_s20, %s686_s29  ;;  %p691_p0 = scmp.lt.u32.totalorder %s899_s20, %s946_s3 }
 0x31f   : > { %p692_p1 = scmp.lt.u32.totalorder %s690_s7, %s686_s29  ;;  %p694_p6 = scmp.lt.u32.totalorder %s686_s29, %s899_s20 }
 0x320   : > { %p688_p8 = pnand %p687_p5, %p955_p11 }
 0x321   : > { %p693_p3 = por %p692_p1, %p691_p0 }
 0x322   : > { %p689_p9 = pneg %p688_p8 }
 0x323   : > { %p695_p12 = por %p694_p6, %p693_p3 }
 0x325   : > { %p696_p13 = pnand %p695_p12, %p689_p9 }
 0x327   : > { %699 = shalt.err (!%p696_p13)
}
 0x328   : > { %587 = dma.vmem_to_hbm [thread:$0]  (%p955_p11), %s901_s11, 128, %s899_s20, %s457_s22  }
 0x329 PF: > { %s483_s6 = sand.u32 1, %s726_s12   ;;  %p956_p7 = scmp.ne.s32.totalorder %s951_s25, 0 }
 0x32a   : > { %p957_p10 = scmp.ge.s32.totalorder %s738_s15, 2  ;;  %s484_s8 = scalar_lea.sflag [#allocation4], %s483_s6 }
 0x32c   : > { %p594_p2 = pnand %p957_p10, %p956_p7 }
 0x32e   : > { %721 = dma.done.wait (!%p594_p2), %s484_s8, 128  }
 0x32f   : > { %723 = vsyncadd (!%p594_p2), %s484_s8, 4294967168  ;;  %p16_p4 = scmp.ge.s32.totalorder %s791_s18, 4   ;;  %s958_s12 = smov %s730_s13 }
 0x330   : > { %s959_s13 = smov %s734_s14  ;;  %s960_s14 = smov %s803_s21 }
 0x331   : > { %s961_s15 = smov %s791_s18  ;;  %18 = sbr.rel (!%p16_p4) target bundleno = 5 (0x5), region = 77 }
 0x338   :  { %489 = vsyncpa [#allocation3], 1 }
 0x339   :  { %491 = vsyncpa [#allocation3 + $0x1], 1 }
 0x33a   :  { %492 = vsyncpa [#allocation4], 1 }
 0x33b   :  { %494 = vsyncpa [#allocation4 + $0x1], 1 }

</bundles_post_ra>
